<compile_context>
chip_gen: v7x
topology: tpu7x:2x2x1
jax: 0.10.0
libtpu: 0.0.40
codegen_flags: <defaults>
</compile_context>

<pallas_src>
import functools

import jax
import jax.numpy as jnp
import numpy as np
from jax.experimental import pallas as pl
from jax.experimental.pallas import tpu as pltpu

LANE = 128          # vreg lane width
SUBLANE_BF16 = 16   # bf16 sublane packing granularity
SUBLANE_F32 = 8     # f32 sublane count


def _round_up(x, m):
    return (x + m - 1) // m * m


# --------------------------------------------------------------------------- #
# Kernel
# --------------------------------------------------------------------------- #
def _ucc_head_kernel(lhs_ref, wh_ref, bh_ref, wc_ref, bc_ref, *rest,
                     seq_len, with_loss):
    if with_loss:
        labels_ref, logits_ref, bce_ref, acc_ref = rest
    else:
        logits_ref, acc_ref = rest

    s = pl.program_id(1)

    @pl.when(s == 0)
    def _init():
        acc_ref[...] = jnp.zeros_like(acc_ref)

    # Streamed mean-pool: accumulate the per-row sum over this seq chunk.
    # Single vectorized reduce (VPU cast + XLU sublane reduce) — the kernel is
    # HBM-bandwidth bound on the (B_TILE, S_CHUNK, H) stream, so this is free
    # and overlaps with the DMA of the next block.  Padded seq rows are zero,
    # so they contribute nothing to the sum.
    acc_ref[...] += jnp.sum(lhs_ref[...].astype(jnp.float32), axis=1)

    @pl.when(s == pl.num_programs(1) - 1)
    def _finalize():
        pooled = acc_ref[...] * (1.0 / float(seq_len))          # torch.mean(·, 1)
        # hidden Linear -> Dropout (identity in eval mode) -> ReLU
        hidden = jnp.dot(pooled.astype(jnp.bfloat16), wh_ref[...],
                         preferred_element_type=jnp.float32) + bh_ref[...]
        hidden = jnp.maximum(hidden, 0.0)
        # classifier Linear (output lane-padded to a full 128-lane vreg)
        logits = jnp.dot(hidden.astype(jnp.bfloat16), wc_ref[...],
                         preferred_element_type=jnp.float32) + bc_ref[...]
        logits_ref[...] = logits

        if with_loss:
            y = labels_ref[...]
            # Numerically stable BCEWithLogits, per element; the 'mean' reduction
            # over the real [B, L] slice happens in the wrapper.
            # log1p(t) emulated with exp/log/where (no reliance on a native log1p
            # lowering): for t < 1e-6, log1p(t) ~= t to well below f32 eps.
            t = jnp.exp(-jnp.abs(logits))
            log1p_t = jnp.where(t < 1e-6, t, jnp.log(1.0 + t))
            bce_ref[...] = jnp.maximum(logits, 0.0) - logits * y + log1p_t


# --------------------------------------------------------------------------- #
# Wrapper
# --------------------------------------------------------------------------- #
def ucc_classifier_forward(input_ids, attention_mask, params, labels=None,
                           *, b_tile=8, s_chunk=128):
    """Mirrors UCC_Classifier.forward. Returns (loss, logits)."""
    del attention_mask  # only consumed by the (untranslated) pretrained backbone

    # Stand-in backbone: deterministic embedding lookup -> [B, S, H] bf16.
    last_hidden = params["emb_table"][input_ids]
    B, S, H = last_hidden.shape
    L = params["wc"].shape[1]

    # TPU-friendly padded shapes.
    b_tile = _round_up(max(b_tile, SUBLANE_F32), SUBLANE_F32)
    s_chunk = _round_up(min(s_chunk, _round_up(S, SUBLANE_BF16)), SUBLANE_BF16)
    B_pad = _round_up(B, b_tile)
    S_pad = _round_up(S, s_chunk)
    L_pad = _round_up(L, LANE)

    lhs = jnp.pad(last_hidden, ((0, B_pad - B), (0, S_pad - S), (0, 0)))
    wh = params["wh"].astype(jnp.bfloat16)                                     # [H, H]
    bh = params["bh"].astype(jnp.float32)                                      # [1, H]
    wc = jnp.pad(params["wc"], ((0, 0), (0, L_pad - L))).astype(jnp.bfloat16)  # [H, Lp]
    bc = jnp.pad(params["bc"], ((0, 0), (0, L_pad - L))).astype(jnp.float32)   # [1, Lp]

    grid = (B_pad // b_tile, S_pad // s_chunk)

    in_specs = [
        pl.BlockSpec((b_tile, s_chunk, H), lambda b, s: (b, s, 0)),  # streamed activations
        pl.BlockSpec((H, H), lambda b, s: (0, 0)),                   # hidden weight [in,out]
        pl.BlockSpec((1, H), lambda b, s: (0, 0)),                   # hidden bias
        pl.BlockSpec((H, L_pad), lambda b, s: (0, 0)),               # classifier weight
        pl.BlockSpec((1, L_pad), lambda b, s: (0, 0)),               # classifier bias
    ]
    logits_spec = pl.BlockSpec((b_tile, L_pad), lambda b, s: (b, 0))
    scratch = [pltpu.VMEM((b_tile, H), jnp.float32)]                 # pooled-sum accumulator
    compiler_params = pltpu.CompilerParams(
        dimension_semantics=("parallel", "arbitrary"),   # batch across cores, seq streamed
        vmem_limit_bytes=32 * 1024 * 1024,
    )

    if labels is None:
        kernel = functools.partial(_ucc_head_kernel, seq_len=S, with_loss=False)
        logits_p = pl.pallas_call(
            kernel,
            out_shape=jax.ShapeDtypeStruct((B_pad, L_pad), jnp.float32),
            grid=grid,
            in_specs=in_specs,
            out_specs=logits_spec,
            scratch_shapes=scratch,
            compiler_params=compiler_params,
        )(lhs, wh, bh, wc, bc)
        return jnp.float32(0.0), logits_p[:B, :L]

    labels_p = jnp.pad(labels.astype(jnp.float32),
                       ((0, B_pad - B), (0, L_pad - L)))
    kernel = functools.partial(_ucc_head_kernel, seq_len=S, with_loss=True)
    logits_p, bce_p = pl.pallas_call(
        kernel,
        out_shape=(jax.ShapeDtypeStruct((B_pad, L_pad), jnp.float32),
                   jax.ShapeDtypeStruct((B_pad, L_pad), jnp.float32)),
        grid=grid,
        in_specs=in_specs + [pl.BlockSpec((b_tile, L_pad), lambda b, s: (b, 0))],
        out_specs=(logits_spec, logits_spec),
        scratch_shapes=scratch,
        compiler_params=compiler_params,
    )(lhs, wh, bh, wc, bc, labels_p)

    # BCEWithLogitsLoss(reduction='mean') over the real (unpadded) logits.
    loss = jnp.mean(bce_p[:B, :L])
    return loss, logits_p[:B, :L]


# --------------------------------------------------------------------------- #
# Deterministic parameter init (shapes from UCC_Classifier.__init__)
# --------------------------------------------------------------------------- #
def init_params(key, vocab_size=100, hidden_size=32, n_labels=7):
    k1, k2, k3, k4, k5 = jax.random.split(key, 5)
    H, L = hidden_size, n_labels
    lim_h = (6.0 / (H + H)) ** 0.5      # xavier_uniform_
    lim_c = (6.0 / (H + L)) ** 0.5
    wh = jax.random.uniform(k1, (H, H), jnp.float32, -lim_h, lim_h)   # stored [in, out]
    wc = jax.random.uniform(k2, (H, L), jnp.float32, -lim_c, lim_c)   # stored [in, out]
    b_lim = 1.0 / (H ** 0.5)            # nn.Linear default bias init
    bh = jax.random.uniform(k3, (1, H), jnp.float32, -b_lim, b_lim)
    bc = jax.random.uniform(k4, (1, L), jnp.float32, -b_lim, b_lim)
    emb = (jax.random.normal(k5, (vocab_size, H), jnp.float32) * 0.02)
    return {
        "wh": wh.astype(jnp.bfloat16), "bh": bh,
        "wc": wc.astype(jnp.bfloat16), "bc": bc,
        "emb_table": emb.astype(jnp.bfloat16),   # activations stay bf16 in HBM
    }


# --------------------------------------------------------------------------- #
# Pure-JAX reference (same bf16 dtype flow) for a correctness check
# --------------------------------------------------------------------------- #
def _reference_forward(input_ids, params, labels):
    lhs = params["emb_table"][input_ids].astype(jnp.float32)
    pooled = jnp.mean(lhs, axis=1)
    hidden = jnp.dot(pooled.astype(jnp.bfloat16), params["wh"],
                     preferred_element_type=jnp.float32) + params["bh"]
    hidden = jnp.maximum(hidden, 0.0)
    logits = jnp.dot(hidden.astype(jnp.bfloat16), params["wc"],
                     preferred_element_type=jnp.float32) + params["bc"]
    y = labels.astype(jnp.float32)
    per = (jnp.maximum(logits, 0.0) - logits * y
           + jnp.log1p(jnp.exp(-jnp.abs(logits))))
    return jnp.mean(per), logits


# --------------------------------------------------------------------------- #
if __name__ == "__main__":
    key = jax.random.PRNGKey(0)
    k_par, k_ids, k_lab = jax.random.split(key, 3)

    B, S, H, L, VOCAB = 2, 32, 32, 7, 100
    params = init_params(k_par, vocab_size=VOCAB, hidden_size=H, n_labels=L)

    input_ids = jax.random.randint(k_ids, (B, S), 0, VOCAB, dtype=jnp.int32)
    attention_mask = jnp.ones((B, S), dtype=jnp.int32)
    labels = jax.random.bernoulli(k_lab, 0.5, (B, L)).astype(jnp.float32)

    fwd = jax.jit(ucc_classifier_forward, static_argnames=("b_tile", "s_chunk"))

    # With labels: grid = (1 batch tile, 2 seq chunks) -> exercises accumulation.
    loss, logits = fwd(input_ids, attention_mask, params, labels,
                       b_tile=8, s_chunk=16)
    jax.block_until_ready((loss, logits))

    # labels=None path (loss == 0).
    loss0, logits0 = fwd(input_ids, attention_mask, params, None,
                         b_tile=8, s_chunk=16)
    jax.block_until_ready((loss0, logits0))

    assert logits.shape == (B, L) and logits0.shape == (B, L)

    ref_loss, ref_logits = _reference_forward(input_ids, params, labels)
    np.testing.assert_allclose(np.asarray(logits), np.asarray(ref_logits),
                               rtol=2e-2, atol=2e-2)
    np.testing.assert_allclose(np.asarray(logits0), np.asarray(ref_logits),
                               rtol=2e-2, atol=2e-2)
    np.testing.assert_allclose(float(loss), float(ref_loss), rtol=2e-2, atol=2e-2)
    assert float(loss0) == 0.0

    print("KERNEL_OK")
</pallas_src>

<mosaic_0001>
module attributes {stable_mosaic.version = 11 : i64} {
  func.func @_ucc_head_kernel(%arg0: i32, %arg1: i32, %arg2: memref<8x16x32xbf16, #tpu.memory_space<vmem>>, %arg3: memref<32x32xbf16, #tpu.memory_space<vmem>>, %arg4: memref<1x32xf32, #tpu.memory_space<vmem>>, %arg5: memref<32x128xbf16, #tpu.memory_space<vmem>>, %arg6: memref<1x128xf32, #tpu.memory_space<vmem>>, %arg7: memref<8x128xf32, #tpu.memory_space<vmem>>, %arg8: memref<8x128xf32, #tpu.memory_space<vmem>>, %arg9: memref<8x128xf32, #tpu.memory_space<vmem>>, %arg10: memref<8x32xf32, #tpu.memory_space<vmem>>) attributes {dimension_semantics = [#tpu.dimension_semantics<parallel>, #tpu.dimension_semantics<arbitrary>], iteration_bounds = array<i64: 1, 2>, scalar_prefetch = 0 : i64, scratch_operands = 1 : i64, tpu.core_type = #tpu.core_type<tc>, window_params = [{transform_indices = @transform_0, window_bounds = array<i64: 8, 16, 32>}, {pipeline_mode = #tpu.pipeline_mode<synchronous>, transform_indices = @transform_1, window_bounds = array<i64: 32, 32>}, {pipeline_mode = #tpu.pipeline_mode<synchronous>, transform_indices = @transform_2, window_bounds = array<i64: 1, 32>}, {pipeline_mode = #tpu.pipeline_mode<synchronous>, transform_indices = @transform_3, window_bounds = array<i64: 32, 128>}, {pipeline_mode = #tpu.pipeline_mode<synchronous>, transform_indices = @transform_4, window_bounds = array<i64: 1, 128>}, {transform_indices = @transform_5, window_bounds = array<i64: 8, 128>}, {transform_indices = @transform_6, window_bounds = array<i64: 8, 128>}, {transform_indices = @transform_7, window_bounds = array<i64: 8, 128>}]} {
    %c0_i32 = arith.constant 0 : i32
    %0 = arith.cmpi eq, %arg1, %c0_i32 : i32
    %1 = arith.extui %0 : i1 to i32
    %c0_i32_0 = arith.constant 0 : i32
    %2 = arith.cmpi ne, %1, %c0_i32_0 : i32
    scf.if %2 {
      %cst_8 = arith.constant 0.000000e+00 : f32
      %12 = vector.broadcast %cst_8 : f32 to vector<8x32xf32>
      %c0_9 = arith.constant 0 : index
      %c0_10 = arith.constant 0 : index
      %13 = vector.load %arg10[%c0_9, %c0_10] : memref<8x32xf32, #tpu.memory_space<vmem>>, vector<8x32xf32>
      tpu.vector_store %arg10[%c0_9, %c0_10], %12 {strides = array<i32>} : memref<8x32xf32, #tpu.memory_space<vmem>>, vector<8x32xf32>,
    } else {
    }
    %c0 = arith.constant 0 : index
    %c0_1 = arith.constant 0 : index
    %3 = vector.load %arg10[%c0, %c0_1] : memref<8x32xf32, #tpu.memory_space<vmem>>, vector<8x32xf32>
    %c0_2 = arith.constant 0 : index
    %c0_3 = arith.constant 0 : index
    %c0_4 = arith.constant 0 : index
    %4 = vector.load %arg2[%c0_2, %c0_3, %c0_4] : memref<8x16x32xbf16, #tpu.memory_space<vmem>>, vector<8x16x32xbf16>
    %5 = arith.extf %4 : vector<8x16x32xbf16> to vector<8x16x32xf32>
    %cst = arith.constant dense<0.000000e+00> : vector<8x32xf32>
    %6 = vector.multi_reduction <add>, %5, %cst [1] : vector<8x16x32xf32> to vector<8x32xf32>
    %7 = arith.addf %3, %6 : vector<8x32xf32>
    %c0_5 = arith.constant 0 : index
    %c0_6 = arith.constant 0 : index
    %8 = vector.load %arg10[%c0_5, %c0_6] : memref<8x32xf32, #tpu.memory_space<vmem>>, vector<8x32xf32>
    tpu.vector_store %arg10[%c0_5, %c0_6], %7 {strides = array<i32>} : memref<8x32xf32, #tpu.memory_space<vmem>>, vector<8x32xf32>,
    %c1_i32 = arith.constant 1 : i32
    %9 = arith.cmpi eq, %arg1, %c1_i32 : i32
    %10 = arith.extui %9 : i1 to i32
    %c0_i32_7 = arith.constant 0 : i32
    %11 = arith.cmpi ne, %10, %c0_i32_7 : i32
    scf.if %11 {
      %c0_8 = arith.constant 0 : index
      %c0_9 = arith.constant 0 : index
      %12 = vector.load %arg10[%c0_8, %c0_9] : memref<8x32xf32, #tpu.memory_space<vmem>>, vector<8x32xf32>
      %cst_10 = arith.constant 3.125000e-02 : f32
      %13 = vector.broadcast %cst_10 : f32 to vector<8x32xf32>
      %14 = arith.mulf %12, %13 : vector<8x32xf32>
      %15 = arith.truncf %14 : vector<8x32xf32> to vector<8x32xbf16>
      %c0_11 = arith.constant 0 : index
      %c0_12 = arith.constant 0 : index
      %16 = vector.load %arg3[%c0_11, %c0_12] : memref<32x32xbf16, #tpu.memory_space<vmem>>, vector<32x32xbf16>
      %cst_13 = arith.constant dense<0.000000e+00> : vector<8x32xf32>
      %17 = tpu.matmul %15, %16, %cst_13 {dimension_numbers = #tpu.dot_dimension_numbers<[1], [0], [0], [1], [0, 0, 1, 1], [], []>} : vector<8x32xbf16>, vector<32x32xbf16>, vector<8x32xf32> -> vector<8x32xf32>
      %c0_14 = arith.constant 0 : index
      %c0_15 = arith.constant 0 : index
      %18 = vector.load %arg4[%c0_14, %c0_15] : memref<1x32xf32, #tpu.memory_space<vmem>>, vector<1x32xf32>
      %19 = vector.broadcast %18 : vector<1x32xf32> to vector<8x32xf32>
      %20 = arith.addf %17, %19 : vector<8x32xf32>
      %cst_16 = arith.constant 0.000000e+00 : f32
      %21 = vector.broadcast %cst_16 : f32 to vector<8x32xf32>
      %22 = arith.maximumf %20, %21 : vector<8x32xf32>
      %23 = arith.truncf %22 : vector<8x32xf32> to vector<8x32xbf16>
      %c0_17 = arith.constant 0 : index
      %c0_18 = arith.constant 0 : index
      %24 = vector.load %arg5[%c0_17, %c0_18] : memref<32x128xbf16, #tpu.memory_space<vmem>>, vector<32x128xbf16>
      %cst_19 = arith.constant dense<0.000000e+00> : vector<8x128xf32>
      %25 = tpu.matmul %23, %24, %cst_19 {dimension_numbers = #tpu.dot_dimension_numbers<[1], [0], [0], [1], [0, 0, 1, 1], [], []>} : vector<8x32xbf16>, vector<32x128xbf16>, vector<8x128xf32> -> vector<8x128xf32>
      %c0_20 = arith.constant 0 : index
      %c0_21 = arith.constant 0 : index
      %26 = vector.load %arg6[%c0_20, %c0_21] : memref<1x128xf32, #tpu.memory_space<vmem>>, vector<1x128xf32>
      %27 = vector.broadcast %26 : vector<1x128xf32> to vector<8x128xf32>
      %28 = arith.addf %25, %27 : vector<8x128xf32>
      %c0_22 = arith.constant 0 : index
      %c0_23 = arith.constant 0 : index
      %29 = vector.load %arg8[%c0_22, %c0_23] : memref<8x128xf32, #tpu.memory_space<vmem>>, vector<8x128xf32>
      tpu.vector_store %arg8[%c0_22, %c0_23], %28 {strides = array<i32>} : memref<8x128xf32, #tpu.memory_space<vmem>>, vector<8x128xf32>,
      %c0_24 = arith.constant 0 : index
      %c0_25 = arith.constant 0 : index
      %30 = vector.load %arg7[%c0_24, %c0_25] : memref<8x128xf32, #tpu.memory_space<vmem>>, vector<8x128xf32>
      %31 = math.absf %28 : vector<8x128xf32>
      %cst_26 = arith.constant 0.000000e+00 : f32
      %32 = vector.broadcast %cst_26 : f32 to vector<8x128xf32>
      %33 = arith.subf %32, %31 : vector<8x128xf32>
      %34 = math.exp %33 : vector<8x128xf32>
      %cst_27 = arith.constant 9.99999997E-7 : f32
      %35 = vector.broadcast %cst_27 : f32 to vector<8x128xf32>
      %36 = arith.cmpf olt, %34, %35 : vector<8x128xf32>
      %cst_28 = arith.constant 1.000000e+00 : f32
      %37 = vector.broadcast %cst_28 : f32 to vector<8x128xf32>
      %38 = arith.addf %37, %34 : vector<8x128xf32>
      %39 = math.log %38 : vector<8x128xf32>
      %40 = arith.select %36, %34, %39 : vector<8x128xi1>, vector<8x128xf32>
      %cst_29 = arith.constant 0.000000e+00 : f32
      %41 = vector.broadcast %cst_29 : f32 to vector<8x128xf32>
      %42 = arith.maximumf %28, %41 : vector<8x128xf32>
      %43 = arith.mulf %28, %30 : vector<8x128xf32>
      %44 = arith.subf %42, %43 : vector<8x128xf32>
      %45 = arith.addf %44, %40 : vector<8x128xf32>
      %c0_30 = arith.constant 0 : index
      %c0_31 = arith.constant 0 : index
      %46 = vector.load %arg9[%c0_30, %c0_31] : memref<8x128xf32, #tpu.memory_space<vmem>>, vector<8x128xf32>
      tpu.vector_store %arg9[%c0_30, %c0_31], %45 {strides = array<i32>} : memref<8x128xf32, #tpu.memory_space<vmem>>, vector<8x128xf32>,
    } else {
    }
    return
  }
  func.func @transform_0(%arg0: i32, %arg1: i32) -> (i32, i32, i32) {
    %c0_i32 = arith.constant 0 : i32
    %c0_i32_0 = arith.constant 0 : i32
    return %arg0, %arg1, %c0_i32 : i32, i32, i32
  }
  func.func @transform_1(%arg0: i32, %arg1: i32) -> (i32, i32) {
    %c0_i32 = arith.constant 0 : i32
    %c0_i32_0 = arith.constant 0 : i32
    %c0_i32_1 = arith.constant 0 : i32
    return %c0_i32, %c0_i32_0 : i32, i32
  }
  func.func @transform_2(%arg0: i32, %arg1: i32) -> (i32, i32) {
    %c0_i32 = arith.constant 0 : i32
    %c0_i32_0 = arith.constant 0 : i32
    %c0_i32_1 = arith.constant 0 : i32
    return %c0_i32, %c0_i32_0 : i32, i32
  }
  func.func @transform_3(%arg0: i32, %arg1: i32) -> (i32, i32) {
    %c0_i32 = arith.constant 0 : i32
    %c0_i32_0 = arith.constant 0 : i32
    %c0_i32_1 = arith.constant 0 : i32
    return %c0_i32, %c0_i32_0 : i32, i32
  }
  func.func @transform_4(%arg0: i32, %arg1: i32) -> (i32, i32) {
    %c0_i32 = arith.constant 0 : i32
    %c0_i32_0 = arith.constant 0 : i32
    %c0_i32_1 = arith.constant 0 : i32
    return %c0_i32, %c0_i32_0 : i32, i32
  }
  func.func @transform_5(%arg0: i32, %arg1: i32) -> (i32, i32) {
    %c0_i32 = arith.constant 0 : i32
    %c0_i32_0 = arith.constant 0 : i32
    return %arg0, %c0_i32 : i32, i32
  }
  func.func @transform_6(%arg0: i32, %arg1: i32) -> (i32, i32) {
    %c0_i32 = arith.constant 0 : i32
    %c0_i32_0 = arith.constant 0 : i32
    return %arg0, %c0_i32 : i32, i32
  }
  func.func @transform_7(%arg0: i32, %arg1: i32) -> (i32, i32) {
    %c0_i32 = arith.constant 0 : i32
    %c0_i32_0 = arith.constant 0 : i32
    return %arg0, %c0_i32 : i32, i32
  }
}

</mosaic_0001>

<bundles_post_ra>
// kernel: ucc_classifier_forward.1
= control target key start
LH: loop header
LB: loop body
LE: loop exit
PB: predicated region body
PF: predicated region fallthrough
CT: control target
= control target key end

     0   :  { %s1051_s24 = smov 0   ;;  %s1053_s25 = smov 0   ;;  %s1162_s0 = inlined_call_operand.vmem [shape: bf16[8,32,32], index: 0, kind: input, shape index: {}]   ;;  %s1163_s1 = inlined_call_operand.vmem [shape: bf16[32,32], index: 1, kind: input, shape index: {}]   ;;  %s1164_s2 = inlined_call_operand.vmem [shape: f32[1,32], index: 2, kind: input, shape index: {}]   ;;  %s1165_s3 = inlined_call_operand.vmem [shape: bf16[32,128], index: 3, kind: input, shape index: {}]   ;;  %s1166_s4 = inlined_call_operand.vmem [shape: f32[1,128], index: 4, kind: input, shape index: {}]   ;;  %s1167_s5 = inlined_call_operand.vmem [shape: f32[8,128], index: 5, kind: input, shape index: {}]   ;;  %s1168_s6 = inlined_call_operand.vmem [shape: f32[8,128], index: 6, kind: output, shape index: {0}]   ;;  %s1169_s7 = inlined_call_operand.vmem [shape: f32[8,128], index: 7, kind: output, shape index: {1}]  }
   0x1   :  { %s1055_s26 = smov 0   ;;  %s1057_s27 = smov 0  }
   0x2   :  { %s1059_s28 = smov 0  }
   0x3 LB: > { %s27_s29 = sadd.s32 1, %s1002_s27  ;;  %p46_p1 = scmp.ne.s32.totalorder %s994_s25, %s990_s24  ;;  %s1006_s28 = sphi %s1059_s28, %s18_s28   ;;  %s1002_s27 = sphi %s1057_s27, %s1173_s27   ;;  %s998_s26 = sphi %s1055_s26, %s1172_s26   ;;  %s994_s25 = sphi %s1053_s25, %s1171_s25   ;;  %s990_s24 = sphi %s1051_s24, %s1170_s24  }
   0x4   : > { %p28_p0 = scmp.ge.s32.totalorder %s27_s29, 2  ;;  %p47_p2 = scmp.eq.s32.totalorder %s1006_s28, 0 }
   0x5   : > { %s39_s8 = sadd.s32 1, %s994_s25  ;;  %p835_p5 = scmp.ge.s32.totalorder %s1006_s28, 2 }
   0x6   : > { %s1175_s29 = smov (%p28_p0, %s27_s29), 0  ;;  %p48_p3 = por %p47_p2, %p46_p1 }
   0x7   : > { %s35_s30 = ssub.s32 %s1002_s27, %s1175_s29  ;;  %253 = sbr.rel (%p835_p5) target bundleno = 22 (0x16), region = 36 }
   0x8   : > { %p37_p4 = scmp.eq.s32.totalorder %s35_s30, 0 }
   0xa   : > { %s1086_s9 = scalar_select %p37_p4, %s994_s25, %s39_s8  }
   0xe   : > { %256 = sbr.rel (!%p48_p3) target bundleno = 22 (0x16), region = 40  ;;  %s258_s10 = sand.u32 (%p48_p3), 1, %s994_s25  }
   0xf   : > { %s855_s11 = sshll.u32 (%p48_p3), %s1002_s27, 3  ;;  %s836_s12 = sshll.u32 (%p48_p3), %s258_s10, 6 }
  0x10   : > { %s266_s15 = scalar_lea.vmem (%p48_p3), %s1162_s0, %s855_s11  ;;  %s260_s16 = scalar_lea.vmem (%p48_p3), [#allocation3], %s836_s12 }
  0x11   : > { %v282_v0 = vld [vmem:[%s266_s15] sm:$0xff] (%p48_p3)   ;;  %v286_v1 = vld [vmem:[%s266_s15 + $0x10] sm:$0xff] (%p48_p3)  }
  0x12   : > { %v290_v2 = vld [vmem:[%s266_s15 + $0x20] sm:$0xff] (%p48_p3)   ;;  %283 = vst [vmem:[%s260_s16] sm:$0xff] (%p48_p3), %v282_v0   ;;  %287 = vst [vmem:[%s260_s16 + $0x8] sm:$0xff] (%p48_p3), %v286_v1   ;;  %v294_v3 = vld [vmem:[%s266_s15 + $0x30] sm:$0xff] (%p48_p3)  }
  0x13   : > { %291 = vst [vmem:[%s260_s16 + $0x10] sm:$0xff] (%p48_p3), %v290_v2   ;;  %v298_v4 = vld [vmem:[%s266_s15 + $0x40] sm:$0xff] (%p48_p3)   ;;  %v302_v5 = vld [vmem:[%s266_s15 + $0x50] sm:$0xff] (%p48_p3)   ;;  %295 = vst [vmem:[%s260_s16 + $0x18] sm:$0xff] (%p48_p3), %v294_v3  }
  0x14   : > { %299 = vst [vmem:[%s260_s16 + $0x20] sm:$0xff] (%p48_p3), %v298_v4   ;;  %303 = vst [vmem:[%s260_s16 + $0x28] sm:$0xff] (%p48_p3), %v302_v5   ;;  %v306_v6 = vld [vmem:[%s266_s15 + $0x60] sm:$0xff] (%p48_p3)   ;;  %v310_v7 = vld [vmem:[%s266_s15 + $0x70] sm:$0xff] (%p48_p3)  }
  0x15   : > { %307 = vst [vmem:[%s260_s16 + $0x30] sm:$0xff] %v306_v6   ;;  %311 = vst [vmem:[%s260_s16 + $0x38] sm:$0xff] %v310_v7  }
  0x16 PF: > { %p839_p6 = scmp.ge.s32.totalorder %s1006_s28, 1  ;;  %p367_p7 = scmp.lt.s32.totalorder %s1006_s28, 3 }
  0x18   : > { %p368_p8 = pnand %p839_p6, %p367_p7 }
  0x19   : > { %s374_s17 = sand.u32 (!%p368_p8), 1, %s990_s24   ;;  %p841_p9 = scmp.ne.s32.totalorder (!%p368_p8), %s998_s26, 0 }
  0x1a   : > { %371 = sbr.rel (%p368_p8) target bundleno = 554 (0x22a), region = 81  ;;  %s840_s18 = sshll.u32 (!%p368_p8), %s374_s17, 6 }
  0x1b   : > { %s376_s19 = scalar_lea.vmem (!%p368_p8), [#allocation3], %s840_s18 }
  0x21   : > { %430 = sbr.rel (%p841_p9) target bundleno = 40 (0x28), region = 89  ;;  %vm431_vm0 = vcmask (!%p841_p9), 261120   ;;  %v1008_v8 = vmov (!%p841_p9), 0.0  }
  0x22   : > { %432 = vst.msk [vmem:[#allocation2] sm:$0xff] (!%p841_p9), %vm431_vm0, %v1008_v8 }
  0x28 PF: > { %v857_v9 = vld [vmem:[%s376_s19] sm:$0xff]   ;;  %v888_v10 = vld [vmem:[%s376_s19 + $0x8] sm:$0xff]   ;;  %vm466_vm1 = vcmask 261120   ;;  %v889_v15 = vld [vmem:[%s376_s19 + $0x10] sm:$0xff]   ;;  %vm547_vm2 = vcmask 1041409   ;;  %vm549_vm3 = vcmask 1042434  }
  0x29   : > { %v858_v11 = vunpack.c.l.bf16 %v857_v9  ;;  %v859_v12 = vunpack.c.h.bf16 %v857_v9  ;;  %v862_v13 = vunpack.c.l.bf16 %v888_v10  ;;  %v863_v14 = vunpack.c.h.bf16 %v888_v10  ;;  %v890_v16 = vld [vmem:[%s376_s19 + $0x18] sm:$0xff]   ;;  %v891_v17 = vld [vmem:[%s376_s19 + $0x20] sm:$0xff]   ;;  %v892_v22 = vld [vmem:[%s376_s19 + $0x28] sm:$0xff]   ;;  %p842_p10 = scmp.ne.s32.totalorder %s998_s26, 1 }
  0x2a   : > { %v866_v18 = vunpack.c.l.bf16 %v889_v15  ;;  %v867_v19 = vunpack.c.h.bf16 %v889_v15  ;;  %v870_v20 = vunpack.c.l.bf16 %v890_v16  ;;  %v871_v21 = vunpack.c.h.bf16 %v890_v16  ;;  %v893_v23 = vld [vmem:[%s376_s19 + $0x30] sm:$0xff]   ;;  %v894_v24 = vld [vmem:[%s376_s19 + $0x38] sm:$0xff]  }
  0x2b   : > { %v874_v25 = vunpack.c.l.bf16 %v891_v17  ;;  %v875_v26 = vunpack.c.h.bf16 %v891_v17  ;;  %v878_v27 = vunpack.c.l.bf16 %v892_v22  ;;  %v879_v28 = vunpack.c.h.bf16 %v892_v22 }
  0x2c   : > { %v882_v29 = vunpack.c.l.bf16 %v893_v23  ;;  %v883_v30 = vunpack.c.h.bf16 %v893_v23  ;;  %v886_v31 = vunpack.c.l.bf16 %v894_v24  ;;  %v887_v32 = vunpack.c.h.bf16 %v894_v24 }
  0x2d   : > { %v467_v33 = vsel %vm466_vm1, %v858_v11, 0.0  ;;  %v468_v34 = vsel %vm466_vm1, %v859_v12, 0.0  ;;  %v476_v35 = vsel %vm466_vm1, %v862_v13, 0.0  ;;  %v477_v36 = vsel %vm466_vm1, %v863_v14, 0.0 }
  0x2e   : > { %v469_v37 = vadd.f32 %v468_v34, %v467_v33  ;;  %v478_v38 = vadd.f32 %v477_v36, %v476_v35  ;;  %v485_v39 = vsel %vm466_vm1, %v866_v18, 0.0  ;;  %v486_v40 = vsel %vm466_vm1, %v867_v19, 0.0 }
  0x2f   : > { %v487_v41 = vadd.f32 %v486_v40, %v485_v39  ;;  %v494_v42 = vsel %vm466_vm1, %v870_v20, 0.0  ;;  %v495_v43 = vsel %vm466_vm1, %v871_v21, 0.0  ;;  %v503_v44 = vsel %vm466_vm1, %v874_v25, 0.0 }
  0x30   : > { %v470_v45 = vrot.slane %v469_v37, 4  ;;  %v479_v46 = vrot.slane %v478_v38, 4  ;;  %v496_v47 = vadd.f32 %v495_v43, %v494_v42  ;;  %v504_v48 = vsel %vm466_vm1, %v875_v26, 0.0 }
  0x31   : > { %v488_v49 = vrot.slane %v487_v41, 4  ;;  %v505_v50 = vadd.f32 %v504_v48, %v503_v44  ;;  %v512_v51 = vsel %vm466_vm1, %v878_v27, 0.0  ;;  %v513_v52 = vsel %vm466_vm1, %v879_v28, 0.0 }
  0x32   : > { %v471_v53 = vadd.f32 %v470_v45, %v469_v37  ;;  %v480_v54 = vadd.f32 %v479_v46, %v478_v38  ;;  %v497_v55 = vrot.slane %v496_v47, 4  ;;  %v514_v56 = vadd.f32 %v513_v52, %v512_v51  ;;  %v433_v46 = vld [vmem:[#allocation2] sm:$0xff]  ;;  %v961_v52 = vld [vmem:[%s1163_s1 + $0x8] sm:$0xff] (!%p842_p10)  }
  0x33   : > { %v489_v57 = vadd.f32 %v488_v49, %v487_v41  ;;  %v506_v58 = vrot.slane %v505_v50, 4  ;;  %v521_v59 = vsel %vm466_vm1, %v882_v29, 0.0  ;;  %v522_v60 = vsel %vm466_vm1, %v883_v30, 0.0 }
  0x34   : > { %v472_v61 = vrot.slane %v471_v53, 2  ;;  %v481_v62 = vrot.slane %v480_v54, 2  ;;  %v498_v63 = vadd.f32 %v497_v55, %v496_v47  ;;  %v515_v0 = vrot.slane %v514_v56, 4 }
  0x35   : > { %v490_v1 = vrot.slane %v489_v57, 2  ;;  %v507_v2 = vadd.f32 %v506_v58, %v505_v50  ;;  %v523_v3 = vadd.f32 %v522_v60, %v521_v59  ;;  %v530_v4 = vsel %vm466_vm1, %v886_v31, 0.0  ;;  %v960_v50 = vld [vmem:[%s1163_s1] sm:$0xff] (!%p842_p10)  }
  0x36   : > { %v473_v5 = vadd.f32 %v472_v61, %v471_v53  ;;  %v482_v6 = vadd.f32 %v481_v62, %v480_v54  ;;  %v499_v7 = vrot.slane %v498_v63, 2  ;;  %v516_v8 = vadd.f32 %v515_v0, %v514_v56  ;;  %v962_v56 = vld [vmem:[%s1165_s3] sm:$0xff] (!%p842_p10)  }
  0x37   : > { %v491_v9 = vadd.f32 %v490_v1, %v489_v57  ;;  %v508_v10 = vrot.slane %v507_v2, 2  ;;  %v524_v11 = vrot.slane %v523_v3, 4  ;;  %v531_v12 = vsel %vm466_vm1, %v887_v32, 0.0  ;;  %v963_v57 = vld [vmem:[%s1165_s3 + $0x8] sm:$0xff] (!%p842_p10)   ;;  %v843_v58 = vld [vmem:[%s1164_s2] ss:$0 sm:$0xff] (!%p842_p10) }
  0x38   : > { %v474_v13 = vrot.slane %v473_v5, 1  ;;  %v483_v14 = vrot.slane %v482_v6, 1  ;;  %v500_v15 = vadd.f32 %v499_v7, %v498_v63  ;;  %v517_v16 = vrot.slane %v516_v8, 2 }
  0x39   : > { %v492_v17 = vrot.slane %v491_v9, 1  ;;  %v509_v18 = vadd.f32 %v508_v10, %v507_v2  ;;  %v525_v19 = vadd.f32 %v524_v11, %v523_v3  ;;  %v532_v20 = vadd.f32 %v531_v12, %v530_v4  ;;  %v847_v2 = vld [vmem:[%s1166_s4] ss:$0 sm:$0xff] (!%p842_p10) }
  0x3a   : > { %v475_v21 = vadd.f32 %v474_v13, %v473_v5  ;;  %v484_v22 = vadd.f32 %v483_v14, %v482_v6  ;;  %v501_v23 = vrot.slane %v500_v15, 1  ;;  %v518_v24 = vadd.f32 %v517_v16, %v516_v8  ;;  %v706_v13 = vld [vmem:[%s1167_s5] sm:$0xff] (!%p842_p10) }
  0x3b   : > { %v493_v25 = vadd.f32 %v492_v17, %v491_v9  ;;  %v510_v26 = vrot.slane %v509_v18, 1  ;;  %v526_v27 = vrot.slane %v525_v19, 2  ;;  %v533_v28 = vrot.slane %v532_v20, 4 }
  0x3c   : > { %v502_v29 = vadd.f32 %v501_v23, %v500_v15  ;;  %v519_v30 = vrot.slane %v518_v24, 1  ;;  %v548_v31 = vsel %vm547_vm2, %v484_v22, %v475_v21  ;;  %vm551_vm4 = vcmask 1043459  }
  0x3d   : > { %v511_v32 = vadd.f32 %v510_v26, %v509_v18  ;;  %v527_v33 = vadd.f32 %v526_v27, %v525_v19  ;;  %v534_v34 = vadd.f32 %v533_v28, %v532_v20  ;;  %v550_v35 = vsel %vm549_vm3, %v493_v25, %v548_v31 }
  0x3e   : > { %v520_v36 = vadd.f32 %v519_v30, %v518_v24  ;;  %v552_v37 = vsel %vm551_vm4, %v502_v29, %v550_v35  ;;  %vm553_vm5 = vcmask 1044484   ;;  %vm555_vm6 = vcmask 1045509  }
  0x3f   : > { %v528_v38 = vrot.slane %v527_v33, 1  ;;  %v535_v39 = vrot.slane %v534_v34, 2  ;;  %v554_v40 = vsel %vm553_vm5, %v511_v32, %v552_v37  ;;  %vm557_vm7 = vcmask 1046534  }
  0x40   : > { %v556_v43 = vsel %vm555_vm6, %v520_v36, %v554_v40  ;;  %vm559_vm8 = vcmask 1047559   ;;  %v1009_v51 = vmov (!%p842_p10), 0.0   ;;  %vm1010_vm9 = vmmov (!%p842_p10), 0  }
  0x41   : > { %v529_v41 = vadd.f32 %v528_v38, %v527_v33  ;;  %v536_v42 = vadd.f32 %v535_v39, %v534_v34  ;;  %901 = vmatprep.subr.bf16.mxu0 (!%p842_p10), %v1009_v51  ;;  %909 = vmatprep.subr.bf16.mxu1 (!%p842_p10), %v1009_v51 }
  0x42   : > { %902 = vmatpush3.bf16.msra.mxu0 (!%p842_p10), %v960_v50  ;;  %905 = vmatprep.mubr.msk.bf16.mxu0 (!%p842_p10), %vm1010_vm9, %v1009_v51 }
  0x43   : > { %v537_v44 = vrot.slane %v536_v42, 1  ;;  %v558_v45 = vsel %vm557_vm7, %v529_v41, %v556_v43  ;;  %903 = vmatprep.subr.bf16.mxu0 (!%p842_p10), %v1009_v51  ;;  %913 = vmatprep.mubr.msk.bf16.mxu1 (!%p842_p10), %vm1010_vm9, %v1009_v51 }
  0x44   : > { %567 = sbr.rel (%p842_p10) target bundleno = 554 (0x22a), region = 93  ;;  %910 = vmatpush3.bf16.msra.mxu1 (!%p842_p10), %v962_v56 }
  0x45   : > { %v538_v47 = vadd.f32 %v537_v44, %v536_v42  ;;  %911 = vmatprep.subr.bf16.mxu1 (!%p842_p10), %v1009_v51 }
  0x46   : > { %904 = vmatpush3.bf16.msra.mxu0 (!%p842_p10), %v961_v52 }
  0x47   : > { %v560_v48 = vsel %vm559_vm8, %v538_v47, %v558_v45 }
  0x48   : > { %v562_v49 = vadd.f32 %v560_v48, %v433_v46  ;;  %912 = vmatpush3.bf16.msra.mxu1 (!%p842_p10), %v963_v57 }
  0x4a   : > { %563 = vst.msk [vmem:[#allocation2] sm:$0xff] %vm466_vm1, %v562_v49 }
  0x51   : > { %v568_v53 = vld [vmem:[#allocation2] sm:$0xff] }
  0x52   : > { %v569_v54 = vmul.f32 0.03125, %v568_v53 }
  0x54   : > { %v570_v55 = vpack.c.bf16 %v569_v54, %v569_v54 }
  0x56   : > { %906 = vmatmul.mubr.msk.bf16.vlgmr.msra.gmra.mrb[0].mxu0 %vm466_vm1, %v570_v55 }
 0x129   : > { %v631_v59 = vpop.f32.mrb[0].mxu0 }
 0x12a   : > { %v632_v60 = vadd.f32 %v843_v58, %v631_v59  ;;  %v907_v61 = vpop.f32.mrb[1].mxu0 }
 0x12b   : > { %v634_v62 = vpop.f32.mrb[2].mxu0 }
 0x12c   : > { %v637_v63 = vmax.f32 %v632_v60, 0.0  ;;  %v908_v0 = vpop.f32.mrb[3].mxu0 }
 0x12e   : > { %v638_v1 = vpack.c.bf16 %v637_v63, %v637_v63 }
 0x130   : > { %914 = vmatmul.mubr.msk.bf16.vlgmr.msra.gmra.mrb[0].mxu1 %vm466_vm1, %v638_v1 }
 0x203   : > { %v699_v3 = vpop.f32.mrb[0].mxu1 }
 0x204   : > { %v700_v4 = vadd.f32 %v847_v2, %v699_v3  ;;  %v915_v5 = vpop.f32.mrb[1].mxu1 }
 0x205   : > { %v702_v6 = vpop.f32.mrb[2].mxu1 }
 0x206   : > { %705 = vst [vmem:[%s1168_s6] sm:$0xff] %v700_v4  ;;  %v707_v7 = vand.u32 2147483647, %v700_v4  ;;  %v916_v8 = vpop.f32.mrb[3].mxu1  ;;  %v716_v14 = vmax.f32 %v700_v4, 0.0  ;;  %v717_v15 = vmul.f32 %v706_v13, %v700_v4 }
 0x208   : > { %v708_v9 = vsub.f32 0.0, %v707_v7  ;;  %v718_v18 = vsub.f32 %v716_v14, %v717_v15 }
 0x20a   : > { %v709_v10 = vmul.f32 1.442695, %v708_v9 }
 0x20c   : > { %964 = vpow2.f32 %v709_v10 }
 0x216   : > { %v965_v11 = vpop.eup %964 }
 0x217   : > { %v712_v12 = vadd.f32 1.0, %v965_v11  ;;  %vm711_vm10 = vcmp.lt.f32.partialorder %v965_v11, 1e-06 }
 0x219   : > { %966 = vlog2.f32 %v712_v12 }
 0x223   : > { %v967_v16 = vpop.eup %966 }
 0x224   : > { %v714_v17 = vmul.f32 0.6931472, %v967_v16 }
 0x226   : > { %v715_v19 = vsel %vm711_vm10, %v965_v11, %v714_v17 }
 0x227   : > { %v719_v20 = vadd.f32 %v718_v18, %v715_v19 }
 0x229   : > { %720 = vst [vmem:[%s1169_s7] sm:$0xff] %v719_v20 }
 0x22a PF: > { %s18_s28 = sadd.s32 1, %s1006_s28   ;;  %s1170_s24 = smov %s994_s25 }
 0x22b   : > { %p15_p11 = scmp.ge.s32.totalorder %s18_s28, 4   ;;  %s1171_s25 = smov %s1086_s9 }
 0x22c   : > { %s1172_s26 = smov %s1002_s27  ;;  %s1173_s27 = smov %s1175_s29 }
 0x22d   :  { %17 = sbr.rel (!%p15_p11) target bundleno = 3 (0x3), region = 143 }

</bundles_post_ra>
